<compile_context>
chip_gen: v7x
topology: tpu7x:2x2x1
jax: 0.10.0
libtpu: 0.0.40
codegen_flags: <defaults>
</compile_context>

<pallas_src>
import jax
import jax.numpy as jnp
from jax.experimental import pallas as pl
from jax.experimental.pallas import tpu as pltpu


def _round_up(x, m):
    return ((x + m - 1) // m) * m


def _vmem_capacity_bytes():
    """Physical VMEM of the local chip (fallback: v7x's 64 MiB per core)."""
    try:
        return int(pltpu.get_tpu_info().vmem_capacity_bytes)
    except Exception:
        return 64 << 20


def _choose_tiling(B, C, hw, itemsize, param_bytes, vmem_budget):
    """Pick (bt, thw, n_s): batch elems / block, lane-dense spatial tile, #spatial tiles.

    Drives the block size from a byte budget (multi-MiB input blocks amortize
    the ~0.35us per-grid-step cost of this HBM-bandwidth-bound kernel) while
    keeping 2x double-buffered I/O + f32 intermediates inside the scoped-VMEM
    budget of the current chip generation, and keeping >=2 grid steps so the
    software pipeline (and v7x's two TensorCores) has work to overlap.
    """
    # bytes per (batch-elem x lane-column) of one block:
    #   2x double-buffered input + 2x double-buffered output (I/O dtype)
    #   + ~2 f32 fn intermediates (y and the residual sum)
    col_bytes = C * (4 * itemsize + 8)
    avail = max(vmem_budget - param_bytes - (2 << 20), col_bytes * 128)
    max_cols = max(128, (avail // col_bytes) // 128 * 128)               # VMEM hard cap
    target_cols = max(128, ((4 << 20) // max(1, C * itemsize)) // 128 * 128)  # ~4 MiB in
    cols = min(max_cols, target_cols)

    hw128 = _round_up(hw, 128)
    if hw128 > cols:
        # spatial extent larger than one block: tile it (lane-dense, 128-mult)
        thw = cols
        n_s = pl.cdiv(hw, thw)          # >= 2 by construction
        return 1, thw, n_s

    # whole (128-padded) spatial extent fits one block: group batch elements
    thw = hw128
    bt = max(1, min(B, cols // thw))
    while B % bt != 0:
        bt -= 1
    # keep >= 2 grid steps (pipeline depth / megacore) when possible
    if (B // bt) < 2 and bt > 1:
        bt = max(1, bt // 2)
        while B % bt != 0:
            bt -= 1
    n_s = 1
    if (B // bt) * n_s < 2 and thw % 256 == 0:
        thw //= 2                        # split spatial into 2 lane-dense blocks
        n_s = 2
    return bt, thw, n_s


def make_residual(fn):
    """Pallas analogue of Residual(fn): apply(x, *params) = fn(x, *params) + x.

    `fn` is traced inside the kernel on a (Bt, C, THW) block (Bt batch
    elements, all channels, one lane-dense tile of the flattened spatial dim)
    and must return float32.  The residual add happens in f32 with a single
    cast at the store.
    """

    def kernel(x_ref, *rest):
        param_refs, o_ref = rest[:-1], rest[-1]
        x = x_ref[...]                                  # (Bt, C, THW) block in VMEM
        params = tuple(p[...] for p in param_refs)
        y = fn(x, *params)                              # f32 inner result
        out = y + x.astype(jnp.float32)                 # residual add in f32
        o_ref[...] = out.astype(o_ref.dtype)            # single final, lane-dense store

    def apply(x, *params):
        B, C, H, W = x.shape
        hw = H * W
        itemsize = x.dtype.itemsize
        param_bytes = sum(int(p.size) * p.dtype.itemsize for p in params)

        # Generation-aware scoped-VMEM budget (~70% of physical, capped):
        # v5e/v6e: 128 MiB -> ~90 MiB usable; v7x: 64 MiB -> ~45 MiB usable.
        vmem_budget = min(int(_vmem_capacity_bytes() * 0.70), 96 << 20)

        bt, thw, n_s = _choose_tiling(B, C, hw, itemsize, param_bytes, vmem_budget)
        hw_pad = thw * n_s

        x2 = x.reshape(B, C, hw)
        if hw_pad != hw:
            # Zero-pad the flattened spatial dim so every block (and the output
            # store) is lane-dense: unmasked vst instead of masked vst.msk.
            # TODO(synk): an inner fn that reduces over the spatial axis would
            # need the pad region masked inside `fn`; pointwise / channel-mixing
            # fns (as wrapped by Residual here) are unaffected since we slice off
            # the pad after the kernel.
            x2 = jnp.pad(x2, ((0, 0), (0, 0), (0, hw_pad - hw)))

        in_specs = [pl.BlockSpec((bt, C, thw), lambda b, s: (b, 0, s))]
        for p in params:
            # Grid-invariant parameters: constant index_map, fetched once.
            # Single-buffer them so they don't double their VMEM footprint
            # (matters most against v7x's 64 MiB VMEM).
            in_specs.append(
                pl.BlockSpec(p.shape, lambda b, s, _nd=p.ndim: (0,) * _nd,
                             pipeline_mode=pl.Buffered(1)))

        # Declared VMEM: 2x double-buffered in/out blocks (I/O dtype) +
        # f32 fn intermediates + single-buffered params + headroom.
        # Never clamped below the true requirement (tiling already fits budget).
        blk_io_bytes = bt * C * thw * itemsize
        f32_tmp_bytes = 2 * bt * C * thw * 4
        needed = 4 * blk_io_bytes + f32_tmp_bytes + param_bytes + (2 << 20)
        vmem_limit = int(max(needed, 16 << 20))

        out = pl.pallas_call(
            kernel,
            out_shape=jax.ShapeDtypeStruct((B, C, hw_pad), x.dtype),
            grid_spec=pltpu.PrefetchScalarGridSpec(
                num_scalar_prefetch=0,
                grid=(B // bt, n_s),
                in_specs=in_specs,
                out_specs=pl.BlockSpec((bt, C, thw), lambda b, s: (b, 0, s)),
            ),
            compiler_params=pltpu.CompilerParams(
                dimension_semantics=("parallel", "parallel"),
                vmem_limit_bytes=vmem_limit),
        )(x2, *params)

        if hw_pad != hw:
            out = out[:, :, :hw]
        return out.reshape(B, C, H, W)

    return apply


# ---- example inner fn: 1x1 conv (channel mix) + bias + GELU ----------------
def conv1x1_gelu(x, w, b):
    """x: (Bt, C, S) block; w: (C, C); b: (C, 1).  Returns f32.

    Per-batch-element channel-mix matmul, unrolled over the small static
    batch-block dim, so channels stay on the sublane axis (no in-kernel
    transpose).  NOTE: for production bf16 activations, cast w once in the
    wrapper and feed bf16 operands (keep preferred_element_type=f32 and the
    f32 residual add) -- kept f32 here to match the f32 reference exactly.
    """
    w32 = w.astype(jnp.float32)
    b32 = b.astype(jnp.float32)
    rows = [jnp.dot(w32, x[i].astype(jnp.float32),
                    preferred_element_type=jnp.float32) + b32
            for i in range(x.shape[0])]
    y = jnp.stack(rows, axis=0) if len(rows) > 1 else rows[0][None]
    return jax.nn.gelu(y)


if __name__ == "__main__":
    key = jax.random.PRNGKey(0)
    kx, kw, kb = jax.random.split(key, 3)

    B, C, H, W = 2, 4, 16, 16
    x = jax.random.normal(kx, (B, C, H, W), dtype=jnp.float32)
    w = jax.random.normal(kw, (C, C), dtype=jnp.float32) * 0.1
    b = jax.random.normal(kb, (C, 1), dtype=jnp.float32) * 0.1

    residual = make_residual(conv1x1_gelu)
    y = residual(x, w, b)
    y = jax.block_until_ready(y)

    # pure-JAX reference of Residual(fn): fn(x) + x
    x2 = x.reshape(B, C, H * W)
    ref = (conv1x1_gelu(x2, w, b) + x2.astype(jnp.float32)).astype(x.dtype)
    ref = ref.reshape(B, C, H, W)
    assert jnp.allclose(y, ref, atol=1e-4, rtol=1e-4), "mismatch vs reference"

    print("KERNEL_OK")
</pallas_src>

<mosaic_0001>
module attributes {stable_mosaic.version = 11 : i64} {
  func.func @kernel(%arg0: i32, %arg1: i32, %arg2: memref<1x4x256xf32, #tpu.memory_space<vmem>>, %arg3: memref<4x4xf32, #tpu.memory_space<vmem>>, %arg4: memref<4x1xf32, #tpu.memory_space<vmem>>, %arg5: memref<1x4x256xf32, #tpu.memory_space<vmem>>) attributes {dimension_semantics = [#tpu.dimension_semantics<parallel>, #tpu.dimension_semantics<parallel>], iteration_bounds = array<i64: 2, 1>, scalar_prefetch = 0 : i64, scratch_operands = 0 : i64, tpu.core_type = #tpu.core_type<tc>, window_params = [{transform_indices = @transform_0, window_bounds = array<i64: 1, 4, 256>}, {pipeline_mode = #tpu.pipeline_mode<synchronous>, transform_indices = @transform_1, window_bounds = array<i64: 4, 4>}, {pipeline_mode = #tpu.pipeline_mode<synchronous>, transform_indices = @transform_2, window_bounds = array<i64: 4, 1>}, {transform_indices = @transform_3, window_bounds = array<i64: 1, 4, 256>}]} {
    %c0 = arith.constant 0 : index
    %c0_0 = arith.constant 0 : index
    %c0_1 = arith.constant 0 : index
    %0 = vector.load %arg2[%c0, %c0_0, %c0_1] : memref<1x4x256xf32, #tpu.memory_space<vmem>>, vector<1x4x256xf32>
    %c0_2 = arith.constant 0 : index
    %c0_3 = arith.constant 0 : index
    %1 = vector.load %arg3[%c0_2, %c0_3] : memref<4x4xf32, #tpu.memory_space<vmem>>, vector<4x4xf32>
    %c0_4 = arith.constant 0 : index
    %c0_5 = arith.constant 0 : index
    %2 = vector.load %arg4[%c0_4, %c0_5] : memref<4x1xf32, #tpu.memory_space<vmem>>, vector<4x1xf32>
    %3 = vector.shape_cast %0 : vector<1x4x256xf32> to vector<4x256xf32>
    %cst = arith.constant dense<0.000000e+00> : vector<4x256xf32>
    %4 = tpu.matmul %1, %3, %cst {dimension_numbers = #tpu.dot_dimension_numbers<[1], [0], [0], [1], [0, 0, 1, 1], [], []>} : vector<4x4xf32>, vector<4x256xf32>, vector<4x256xf32> -> vector<4x256xf32>
    %5 = vector.broadcast %2 : vector<4x1xf32> to vector<4x256xf32>
    %6 = arith.addf %4, %5 : vector<4x256xf32>
    %7 = vector.shape_cast %6 : vector<4x256xf32> to vector<1x4x256xf32>
    %8 = arith.mulf %7, %7 : vector<1x4x256xf32>
    %9 = arith.mulf %7, %8 : vector<1x4x256xf32>
    %cst_6 = arith.constant 4.471500e-02 : f32
    %10 = vector.broadcast %cst_6 : f32 to vector<1x4x256xf32>
    %11 = arith.mulf %10, %9 : vector<1x4x256xf32>
    %12 = arith.addf %7, %11 : vector<1x4x256xf32>
    %cst_7 = arith.constant 0.797884583 : f32
    %13 = vector.broadcast %cst_7 : f32 to vector<1x4x256xf32>
    %14 = arith.mulf %13, %12 : vector<1x4x256xf32>
    %15 = math.tanh %14 : vector<1x4x256xf32>
    %cst_8 = arith.constant 1.000000e+00 : f32
    %16 = vector.broadcast %cst_8 : f32 to vector<1x4x256xf32>
    %17 = arith.addf %16, %15 : vector<1x4x256xf32>
    %cst_9 = arith.constant 5.000000e-01 : f32
    %18 = vector.broadcast %cst_9 : f32 to vector<1x4x256xf32>
    %19 = arith.mulf %18, %17 : vector<1x4x256xf32>
    %20 = arith.mulf %7, %19 : vector<1x4x256xf32>
    %21 = arith.addf %20, %0 : vector<1x4x256xf32>
    %c0_10 = arith.constant 0 : index
    %c0_11 = arith.constant 0 : index
    %c0_12 = arith.constant 0 : index
    %22 = vector.load %arg5[%c0_10, %c0_11, %c0_12] : memref<1x4x256xf32, #tpu.memory_space<vmem>>, vector<1x4x256xf32>
    tpu.vector_store %arg5[%c0_10, %c0_11, %c0_12], %21 {strides = array<i32>} : memref<1x4x256xf32, #tpu.memory_space<vmem>>, vector<1x4x256xf32>,
    return
  }
  func.func @transform_0(%arg0: i32, %arg1: i32) -> (i32, i32, i32) {
    %c0_i32 = arith.constant 0 : i32
    %c0_i32_0 = arith.constant 0 : i32
    return %arg0, %c0_i32, %arg1 : i32, i32, i32
  }
  func.func @transform_1(%arg0: i32, %arg1: i32) -> (i32, i32) {
    %c0_i32 = arith.constant 0 : i32
    %c0_i32_0 = arith.constant 0 : i32
    %c0_i32_1 = arith.constant 0 : i32
    return %c0_i32, %c0_i32_0 : i32, i32
  }
  func.func @transform_2(%arg0: i32, %arg1: i32) -> (i32, i32) {
    %c0_i32 = arith.constant 0 : i32
    %c0_i32_0 = arith.constant 0 : i32
    %c0_i32_1 = arith.constant 0 : i32
    return %c0_i32, %c0_i32_0 : i32, i32
  }
  func.func @transform_3(%arg0: i32, %arg1: i32) -> (i32, i32, i32) {
    %c0_i32 = arith.constant 0 : i32
    %c0_i32_0 = arith.constant 0 : i32
    return %arg0, %c0_i32, %arg1 : i32, i32, i32
  }
}

</mosaic_0001>

<bundles_post_ra>
// kernel: tpu_custom_call.1
= control target key start
LH: loop header
LB: loop body
LE: loop exit
PB: predicated region body
PF: predicated region fallthrough
CT: control target
= control target key end

     0   :  { %8 = vsyncpa [#allocation3], 0  ;;  %s834_s0 = inlined_call_operand.hbm [shape: f32[2,4,256], index: 0, kind: input, shape index: {}]   ;;  %s835_s1 = inlined_call_operand.vmem [shape: f32[4,4], index: 1, kind: input, shape index: {}]   ;;  %s836_s2 = inlined_call_operand.vmem [shape: f32[4,1], index: 2, kind: input, shape index: {}]   ;;  %s837_s3 = inlined_call_operand.hbm [shape: f32[2,4,256], index: 3, kind: output, shape index: {}]  }
   0x1   :  { %10 = vsyncpa [#allocation3 + $0x1], 0 }
   0x2   :  { %11 = vsyncpa [#allocation4], 0 }
   0x3   :  { %13 = vsyncpa [#allocation4 + $0x1], 0  ;;  %s652_s12 = smov 0   ;;  %s654_s13 = smov 0  }
   0x4   :  { %s656_s14 = smov 0   ;;  %s658_s15 = smov 0  }
   0x5   :  { %s660_s16 = smov 0   ;;  %s662_s17 = smov 0  }
   0x6 LB: > { %s424_s18 = sadd.s32 4294967295, %s626_s17   ;;  %s425_s19 = sadd.s32 4294967294, %s626_s17   ;;  %s626_s17 = sphi %s662_s17, %s19_s17   ;;  %s622_s16 = sphi %s660_s16, %s853_s16   ;;  %s618_s15 = sphi %s658_s15, %s852_s15   ;;  %s614_s14 = sphi %s656_s14, %s851_s14   ;;  %s610_s13 = sphi %s654_s13, %s850_s13   ;;  %s606_s12 = sphi %s652_s12, %s849_s12  }
   0x7   : > { %s31_s20 = sadd.s32 1, %s622_s16  ;;  %s40_s21 = sadd.s32 1, %s614_s14 }
   0x8   : > { %p33_p0 = scmp.ge.s32.totalorder %s31_s20, 2  ;;  %p47_p1 = scmp.ne.s32.totalorder %s614_s14, %s610_s13 }
   0x9   : > { %p48_p2 = scmp.eq.s32.totalorder %s626_s17, 0  ;;  %p53_p3 = scmp.ne.s32.totalorder %s610_s13, %s606_s12 }
   0xa   : > { %s855_s20 = smov (%p33_p0, %s31_s20), 0  ;;  %p54_p5 = scmp.eq.s32.totalorder %s424_s18, 0 }
   0xb   : > { %p693_p4 = por %p48_p2, %p47_p1  ;;  %s35_s23 = ssub.s32 %s622_s16, %s855_s20 }
   0xc   : > { %p121_p6 = scmp.eq.s32.totalorder %s424_s18, 1  ;;  %p38_p7 = scmp.eq.s32.totalorder %s35_s23, 0 }
   0xd   : > { %p699_p8 = por %p54_p5, %p53_p3  ;;  %p127_p10 = scmp.eq.s32.totalorder %s425_s19, 1 }
   0xe   : > { %p703_p9 = por %p121_p6, %p47_p1  ;;  %p456_p13 = scmp.lt.s32.totalorder %s626_s17, 2 }
   0xf   : > { %s708_s26 = scalar_select %p38_p7, %s614_s14, %s40_s21  }
  0x10   : > { %s841_s25 = scalar_select %p703_p9, 1, 0 }
  0x11   : > { %p710_p11 = por %p127_p10, %p53_p3  ;;  %s153_s28 = sand.u32 1, %s614_s14  }
  0x12   : > { %s428_s29 = sshll.u32 %s153_s28, 3  ;;  %s442_s30 = sshll.u32 %s622_s16, 7 }
  0x13   : > { %s842_s27 = scalar_select %p710_p11, 1, 0 }
  0x14   : > { %s721_s6 = scalar_lea.hbm %s834_s0, %s442_s30  ;;  %s157_s7 = scalar_lea.vmem [#allocation2], %s428_s29 }
  0x15   : > { %s167_s8 = sshll.u32 %s157_s7, 4  ;;  %p727_p0 = pnand %p456_p13, %p693_p4  ;;  %s723_s8 = int_to_ptr.vmem [resolvable:$true] %s167_s8 }
  0x16   : > { %s154_s10 = scalar_lea.sflag [#allocation3], %s153_s28  ;;  %s514_s11 = scalar_lea.hbm %s721_s6, 128 }
  0x17   : > { %p515_p3 = scmp.ne.s32.totalorder %s721_s6, %s514_s11  ;;  %p516_p5 = pneg %p727_p0 }
  0x18   : > { %s519_s21 = scalar_lea.hbm %s834_s0, 256  ;;  %p520_p4 = scmp.lt.u32.totalorder %s721_s6, %s834_s0 }
  0x19   : > { %p517_p6 = pnand %p516_p5, %p515_p3  ;;  %p521_p10 = scmp.lt.u32.totalorder %s519_s21, %s514_s11 }
  0x1a   : > { %p523_p12 = scmp.lt.u32.totalorder %s514_s11, %s721_s6 }
  0x1b   : > { %p518_p7 = pneg %p517_p6  ;;  %p522_p13 = por %p521_p10, %p520_p4 }
  0x1d   : > { %p524_p1 = por %p523_p12, %p522_p13 }
  0x1f   : > { %p525_p2 = pnand %p524_p1, %p518_p7 }
  0x21   : > { %528 = shalt.err (!%p525_p2)
}
  0x22   : > { %s529_s28 = scalar_lea.vmem %s723_s8, 128  ;;  %s628_s29 = smov [#allocation2]  }
  0x23   : > { %p530_p3 = scmp.ne.s32.totalorder %s723_s8, %s529_s28  ;;  %s534_s30 = sshll.u32 %s628_s29, 4  ;;  %s535_s30 = int_to_ptr.vmem [resolvable:$false] %s534_s30 }
  0x24   : > { %s536_s4 = scalar_lea.vmem %s535_s30, 256  ;;  %p537_p9 = scmp.lt.s32.totalorder %s723_s8, %s535_s30 }
  0x25   : > { %p532_p6 = pnand %p530_p3, %p516_p5  ;;  %p538_p4 = scmp.lt.s32.totalorder %s536_s4, %s529_s28 }
  0x27   : > { %p533_p11 = pneg %p532_p6  ;;  %p539_p10 = por %p538_p4, %p537_p9 }
  0x29   : > { %p540_p12 = pnand %p539_p10, %p533_p11 }
  0x2b   : > { %543 = shalt.err (!%p540_p12)
}
  0x2c   : > { %451 = dma.hbm_to_vmem [thread:$0]  (!%p727_p0), %s721_s6, 128, %s723_s8, %s154_s10  }
  0x2d   : > { %p844_p1 = scmp.lt.s32.totalorder %s626_s17, 3  ;;  %p845_p2 = scmp.ge.s32.totalorder %s626_s17, 1 }
  0x2f   : > { %p173_p5 = pnand %p845_p2, %p844_p1 }
  0x30   : > { %s763_s5 = sand.u32 (!%p173_p5), 1, %s610_s13  }
  0x31   : > { %176 = sbr.rel (%p173_p5) target bundleno = 322 (0x142), region = 32  ;;  %s432_s7 = sshll.u32 (!%p173_p5), %s763_s5, 3 }
  0x32   : > { %s179_s11 = scalar_lea.sflag (!%p173_p5), [#allocation3], %s763_s5  ;;  %s182_s9 = scalar_lea.vmem (!%p173_p5), [#allocation2], %s432_s7 }
  0x38   : > { %597 = dma.done.wait (%p699_p8), %s179_s11, 128  }
  0x39   : > { %599 = vsyncadd (%p699_p8), %s179_s11, 4294967168  ;;  %v629_v0 = vmov 0.0   ;;  %v630_v1 = vmov 0   ;;  %v207_v2 = vld [vmem:[%s182_s9] sm:$0xff]  ;;  %vm221_vm0 = vcmask 1043456   ;;  %vm217_vm1 = vcmask 31744  }
  0x3a   : > { %290 = vmatprep.mubr.f32.mxu0 %v629_v0  ;;  %508 = vset.pattern.permute.xlu0 %v630_v1  ;;  %v209_v3 = vld [vmem:[%s836_s2] sm:$0xf]  ;;  %v216_v4 = vcombine.high %v207_v2, %v207_v2  ;;  %s443_s24 = sshll.u32 %s618_s15, 7  ;;  %s204_s19 = scalar_lea.vmem [#allocation5], %s432_s7 }
  0x3b   : > { %212 = vperm.xlu0 %508, %v209_v3   ;;  %v208_v5 = vld [vmem:[%s835_s1] sm:$0xf]  ;;  %s340_s21 = sshll.u32 %s204_s19, 4  ;;  %s785_s28 = scalar_lea.hbm %s837_s3, %s443_s24  ;;  %s787_s21 = int_to_ptr.vmem [resolvable:$true] %s340_s21 }
  0x3c   : > { %434 = vmatprep.subr.msk.mxu0 %vm221_vm0, %v216_v4  ;;  %s324_s29 = scalar_lea.sflag [#allocation4], %s763_s5  ;;  %s544_s30 = scalar_lea.vmem %s787_s21, 128 }
  0x3d   : > { %435 = vmatpush1.msk.msra.mxu0 %vm221_vm0, %v207_v2  ;;  %p545_p8 = scmp.ne.s32.totalorder %s787_s21, %s544_s30  ;;  %p846_p9 = scmp.ne.s32.totalorder %s841_s25, 0 }
  0x3e   : > { %436 = vmatmul.mubr.msk.f32.vlgmr.msra.gmra.mrb[0].mxu0 %vm217_vm1, %v208_v5  ;;  %s631_s15 = smov [#allocation5]  }
  0x3f   : > { %p546_p11 = pnand %p545_p8, %p846_p9  ;;  %s548_s4 = sshll.u32 %s631_s15, 4  ;;  %s549_s4 = int_to_ptr.vmem [resolvable:$false] %s548_s4 }
  0x40   : > { %s550_s7 = scalar_lea.vmem %s549_s4, 256  ;;  %p551_p7 = scmp.lt.s32.totalorder %s787_s21, %s549_s4 }
  0x41   : > { %p547_p0 = pneg %p546_p11  ;;  %p552_p13 = scmp.lt.s32.totalorder %s550_s7, %s544_s30 }
  0x43   : > { %p553_p3 = por %p552_p13, %p551_p7 }
  0x45   : > { %p554_p6 = pnand %p553_p3, %p547_p0 }
  0xba   : > { %v213_v6 = vpop.permute.xlu0 %212 }
 0x111   : > { %v292_v7 = vpop.f32.mrb[0].mxu0 }
 0x112   : > { %v293_v8 = vadd.f32 %v292_v7, %v213_v6  ;;  %v294_v9 = vpop.f32.mrb[1].mxu0 }
 0x113   : > { %v295_v10 = vadd.f32 %v294_v9, %v213_v6 }
 0x114   : > { %v297_v11 = vmul.f32 %v293_v8, %v293_v8 }
 0x115   : > { %v298_v12 = vmul.f32 %v295_v10, %v295_v10 }
 0x116   : > { %v299_v13 = vmul.f32 %v297_v11, %v293_v8 }
 0x117   : > { %v300_v14 = vmul.f32 %v298_v12, %v295_v10 }
 0x118   : > { %v301_v15 = vmul.f32 0.044715, %v299_v13 }
 0x119   : > { %v302_v16 = vmul.f32 0.044715, %v300_v14 }
 0x11a   : > { %v303_v17 = vadd.f32 %v301_v15, %v293_v8 }
 0x11b   : > { %v304_v18 = vadd.f32 %v302_v16, %v295_v10 }
 0x11c   : > { %v305_v19 = vmul.f32 0.7978846, %v303_v17 }
 0x11d   : > { %v306_v20 = vmul.f32 0.7978846, %v304_v18 }
 0x11e   : > { %510 = vtanh.f32 %v305_v19 }
 0x11f   : > { %512 = vtanh.f32 %v306_v20 }
 0x128   : > { %v511_v21 = vpop.eup %510 }
 0x129   : > { %v513_v22 = vpop.eup %512  ;;  %v309_v23 = vadd.f32 1.0, %v511_v21 }
 0x12a   : > { %v310_v24 = vadd.f32 1.0, %v513_v22 }
 0x12b   : > { %v311_v25 = vmul.f32 0.5, %v309_v23 }
 0x12c   : > { %v312_v26 = vmul.f32 0.5, %v310_v24 }
 0x12d   : > { %v313_v27 = vmul.f32 %v311_v25, %v293_v8 }
 0x12e   : > { %v314_v28 = vmul.f32 %v312_v26, %v295_v10 }
 0x12f   : > { %v316_v29 = vadd.f32 %v313_v27, %v207_v2 }
 0x130   : > { %v317_v30 = vadd.f32 %v314_v28, %v216_v4 }
 0x132   : > { %v320_v31 = vcombine.low %v316_v29, %v317_v30 }
 0x134   : > { %322 = vst [vmem:[%s204_s19] sm:$0xff] %v320_v31 }
 0x135   : > { %557 = shalt.err (!%p554_p6)
}
 0x136   : > { %s558_s5 = scalar_lea.hbm %s785_s28, 128  ;;  %s562_s6 = scalar_lea.hbm %s837_s3, 256 }
 0x137   : > { %p559_p4 = scmp.ne.s32.totalorder %s785_s28, %s558_s5  ;;  %p563_p1 = scmp.lt.u32.totalorder %s785_s28, %s837_s3 }
 0x138   : > { %p564_p2 = scmp.lt.u32.totalorder %s562_s6, %s558_s5  ;;  %p566_p8 = scmp.lt.u32.totalorder %s558_s5, %s785_s28 }
 0x139   : > { %p560_p10 = pnand %p559_p4, %p846_p9 }
 0x13a   : > { %p565_p5 = por %p564_p2, %p563_p1 }
 0x13b   : > { %p561_p12 = pneg %p560_p10 }
 0x13c   : > { %p567_p11 = por %p566_p8, %p565_p5 }
 0x13e   : > { %p568_p0 = pnand %p567_p11, %p561_p12 }
 0x140   : > { %571 = shalt.err (!%p568_p0)
}
 0x141   : > { %446 = dma.vmem_to_hbm [thread:$0]  (%p846_p9), %s787_s21, 128, %s785_s28, %s324_s29  }
 0x142 PF: > { %s352_s18 = sand.u32 1, %s606_s12   ;;  %p847_p7 = scmp.ne.s32.totalorder %s842_s27, 0 }
 0x143   : > { %p848_p13 = scmp.ge.s32.totalorder %s626_s17, 2  ;;  %s353_s24 = scalar_lea.sflag [#allocation4], %s352_s18 }
 0x145   : > { %p453_p3 = pnand %p848_p13, %p847_p7 }
 0x147   : > { %601 = dma.done.wait (!%p453_p3), %s353_s24, 128  }
 0x148   : > { %603 = vsyncadd (!%p453_p3), %s353_s24, 4294967168  ;;  %s19_s17 = sadd.s32 1, %s626_s17   ;;  %s849_s12 = smov %s610_s13 }
 0x149   : > { %p16_p6 = scmp.ge.s32.totalorder %s19_s17, 4   ;;  %s850_s13 = smov %s614_s14 }
 0x14a   : > { %s851_s14 = smov %s708_s26  ;;  %s852_s15 = smov %s622_s16 }
 0x14b   : > { %s853_s16 = smov %s855_s20  ;;  %18 = sbr.rel (!%p16_p6) target bundleno = 6 (0x6), region = 77 }
 0x152   :  { %358 = vsyncpa [#allocation3], 1 }
 0x153   :  { %360 = vsyncpa [#allocation3 + $0x1], 1 }
 0x154   :  { %361 = vsyncpa [#allocation4], 1 }
 0x155   :  { %363 = vsyncpa [#allocation4 + $0x1], 1 }

</bundles_post_ra>
